<compile_context>
chip_gen: v7x
topology: tpu7x:2x2x1
jax: 0.10.0
libtpu: 0.0.40
codegen_flags: <defaults>
</compile_context>

<pallas_src>
import functools

import jax
import jax.numpy as jnp
from jax.experimental import pallas as pl
from jax.experimental.pallas import tpu as pltpu

HID = 10
OUT_DIMS = ([2, 2], [2, 2, 2], [2, 2], [2])      # per-stage fc_out head widths
CAT_DIMS = [sum(d) for d in OUT_DIMS]            # [4, 6, 4, 2]
IN_DIMS = [2, 1, 1, 1]                           # per-stage input widths
PAD_COLS = 16                                    # slab column padding (max fused width)
TOTAL_OUT = sum(CAT_DIMS) + HID                  # 26 = o1|o2|o3|o4|hidden
MAX_TB = 4096                                    # batch tile cap (safe for v7x 64 MiB VMEM)


def _round_up(x, m):
    return -(-x // m) * m


# ------------------------- static parameter-slab layout ----------------------

def _build_layout():
    layout, row = {}, 0

    def add(name, nrows, ncols):
        nonlocal row
        row = _round_up(row, 8)                  # 8-aligned starts -> cheap ref slices
        layout[name] = (row, nrows, ncols)
        row += nrows

    add("w_h1_1", 2, HID)                        # stage-1 fc_hid[0] (acts on subjemb)
    for i in range(4):
        add(f"w_in_{i}", IN_DIMS[i], HID)        # fc_inp
        add(f"w_h2_{i}", HID, HID)               # fc_hid[2]
        add(f"w_f_{i}", HID, CAT_DIMS[i] + (HID if i < 3 else 0))  # [fc_out | fc_hid[0]_next]
    add("b_h1_1", 1, HID)
    for i in range(4):
        add(f"b_cat_{i}", 1, HID)                # b_in + b_h2 (folded)
        add(f"b_f_{i}", 1, CAT_DIMS[i] + (HID if i < 3 else 0))
    return layout, _round_up(row, 8)


LAYOUT, N_ROWS = _build_layout()                 # N_ROWS == 240 (15 KiB slab)


# ----------------------------------- kernel ----------------------------------

def subj_kernel(s1_ref, s2_ref, s3_ref, s4_ref, se_ref, p_ref, out_ref):
    def w(name):
        r0, nr, nc = LAYOUT[name]
        return p_ref[r0:r0 + nr, 0:nc]           # 8-aligned row start, static slice

    def mm(a, name):
        return jnp.dot(a, w(name), preferred_element_type=jnp.float32)

    stage_inp = [s1_ref[...], s2_ref[...], s3_ref[...], s4_ref[...]]
    subjemb = se_ref[...]

    # stage-1 previous-hidden projection (fc_hid[0] applied to subject embedding)
    hmid_pre = mm(subjemb, "w_h1_1") + w("b_h1_1")

    off = 0
    h = None
    for i in range(4):
        hmid = jnp.tanh(hmid_pre)
        # two small dots instead of a lane-dim concat; bias folded (b_in + b_h2)
        pre = mm(stage_inp[i], f"w_in_{i}") + mm(hmid, f"w_h2_{i}") + w(f"b_cat_{i}")
        h = jnp.tanh(pre)
        fused = mm(h, f"w_f_{i}") + w(f"b_f_{i}")          # [fc_out | fc_hid[0]_next]
        out_ref[:, off:off + CAT_DIMS[i]] = fused[:, :CAT_DIMS[i]]   # store early
        off += CAT_DIMS[i]
        if i < 3:
            hmid_pre = fused[:, CAT_DIMS[i]:]   # next stage's fc_hid[0] pre-activation
    out_ref[:, off:off + HID] = h                # final hidden state


# -------------------- parameter packing (param-prep time, NOT per call) -------

def pack_params(stage_params):
    """Pack all fused weights/biases into one (N_ROWS, PAD_COLS) f32 slab. Call once."""
    slab = jnp.zeros((N_ROWS, PAD_COLS), jnp.float32)

    def put(s, name, arr):
        r0, nr, nc = LAYOUT[name]
        return s.at[r0:r0 + nr, :nc].set(jnp.asarray(arr, jnp.float32).reshape(nr, nc))

    slab = put(slab, "w_h1_1", stage_params[0][2])
    slab = put(slab, "b_h1_1", stage_params[0][3])
    for i in range(4):
        w_in, b_in, w_h1, b_h1, w_h2, b_h2, w_out, b_out = stage_params[i]
        if i < 3:
            w_f = jnp.concatenate([w_out, stage_params[i + 1][2]], axis=1)
            b_f = jnp.concatenate([b_out, stage_params[i + 1][3]], axis=1)
        else:
            w_f, b_f = w_out, b_out
        slab = put(slab, f"w_in_{i}", w_in)
        slab = put(slab, f"w_h2_{i}", w_h2)
        slab = put(slab, f"b_cat_{i}", b_in + b_h2)         # folded bias
        slab = put(slab, f"w_f_{i}", w_f)
        slab = put(slab, f"b_f_{i}", b_f)
    return slab


# ----------------------------------- wrapper ----------------------------------

@jax.jit
def subj_model(stage1inp, stage2inp, stage3inp, stage4inp, uid, emb, slab):
    B = stage1inp.shape[0]

    # embedding gather in plain JAX; keeps integer indexing out of the kernel
    subjemb = emb[uid - 1]                                   # (B, 2)

    TB = min(MAX_TB, _round_up(B, 8))                        # batch tile (multiple of 8)
    B_pad = _round_up(B, TB)

    def padb(x):
        x = x.astype(jnp.float32)
        if B_pad == B:
            return x
        return jnp.pad(x, ((0, B_pad - B), (0, 0)))

    s1, s2, s3, s4, se = map(padb, (stage1inp, stage2inp, stage3inp, stage4inp, subjemb))

    def row_spec(width):
        return pl.BlockSpec((TB, width), lambda i: (i, 0))

    out = pl.pallas_call(
        subj_kernel,
        out_shape=jax.ShapeDtypeStruct((B_pad, TOTAL_OUT), jnp.float32),
        grid=(B_pad // TB,),
        in_specs=[row_spec(2), row_spec(1), row_spec(1), row_spec(1), row_spec(2),
                  pl.BlockSpec((N_ROWS, PAD_COLS), lambda i: (0, 0))],   # VMEM-resident weights
        out_specs=row_spec(TOTAL_OUT),
        compiler_params=pltpu.CompilerParams(
            dimension_semantics=("parallel",),               # v7x: shard batch blocks over 2 TCs
            vmem_limit_bytes=32 * 1024 * 1024),
    )(s1, s2, s3, s4, se, slab)

    out = out[:B]

    # split the single (B, 26) output back into per-stage head lists + hidden state
    stage_outs, off = [], 0
    for dims in OUT_DIMS:
        souts = []
        for d in dims:
            souts.append(out[:, off:off + d])
            off += d
        stage_outs.append(souts)
    hidden = out[:, off:off + HID]
    return stage_outs[0], stage_outs[1], stage_outs[2], stage_outs[3], hidden


# ------------------------------ parameter init --------------------------------

def _linear(key, fan_in, fan_out):
    k1, k2 = jax.random.split(key)
    bound = 1.0 / float(fan_in) ** 0.5
    w = jax.random.uniform(k1, (fan_in, fan_out), jnp.float32, -bound, bound)
    b = jax.random.uniform(k2, (1, fan_out), jnp.float32, -bound, bound)
    return w, b


def _stage_params(key, input_dim, in_hidden_dim, hidden_dim, output_dims):
    ks = jax.random.split(key, 3 + len(output_dims))
    w_in, b_in = _linear(ks[0], input_dim, hidden_dim)
    w_h1, b_h1 = _linear(ks[1], in_hidden_dim, hidden_dim)
    w_h2, b_h2 = _linear(ks[2], hidden_dim, hidden_dim)
    outs = [_linear(k, hidden_dim, d) for k, d in zip(ks[3:], output_dims)]
    w_out = jnp.concatenate([w for w, _ in outs], axis=1)    # fused fc_out heads
    b_out = jnp.concatenate([b for _, b in outs], axis=1)
    return (w_in, b_in, w_h1, b_h1, w_h2, b_h2, w_out, b_out)


def init_params(key, n_subjects):
    ke, k1, k2, k3, k4 = jax.random.split(key, 5)
    emb = jax.random.normal(ke, (n_subjects, 2), jnp.float32)
    stages = [
        _stage_params(k1, 2, 2, HID, OUT_DIMS[0]),
        _stage_params(k2, 1, HID, HID, OUT_DIMS[1]),
        _stage_params(k3, 1, HID, HID, OUT_DIMS[2]),
        _stage_params(k4, 1, HID, HID, OUT_DIMS[3]),
    ]
    return emb, stages


# --------------------------- pure-JAX reference --------------------------------

def _ref_stage(x, hidden, p):
    w_in, b_in, w_h1, b_h1, w_h2, b_h2, w_out, b_out = p
    h = jnp.tanh(x @ w_in + b_in + (jnp.tanh(hidden @ w_h1 + b_h1) @ w_h2 + b_h2))
    return h, h @ w_out + b_out


def ref_model(s1, s2, s3, s4, uid, emb, stage_params):
    subjemb = emb[uid - 1]
    h, o1 = _ref_stage(s1, subjemb, stage_params[0])
    h, o2 = _ref_stage(s2, h, stage_params[1])
    h, o3 = _ref_stage(s3, h, stage_params[2])
    h, o4 = _ref_stage(s4, h, stage_params[3])
    return o1, o2, o3, o4, h


# ------------------------------------ main --------------------------------------

if __name__ == "__main__":
    B = 8
    N_SUBJECTS = 5

    key = jax.random.PRNGKey(0)
    kp, k1, k2, k3, k4, ku = jax.random.split(key, 6)

    emb, stage_params = init_params(kp, N_SUBJECTS)
    slab = pack_params(stage_params)          # built ONCE, outside the forward path

    stage1inp = jax.random.normal(k1, (B, 2), jnp.float32)
    stage2inp = jax.random.normal(k2, (B, 1), jnp.float32)
    stage3inp = jax.random.normal(k3, (B, 1), jnp.float32)
    stage4inp = jax.random.normal(k4, (B, 1), jnp.float32)
    uid = jax.random.randint(ku, (B,), 1, N_SUBJECTS + 1, jnp.int32)

    s1o, s2o, s3o, s4o, hidden = subj_model(
        stage1inp, stage2inp, stage3inp, stage4inp, uid, emb, slab)
    jax.block_until_ready(hidden)

    # correctness check against pure-JAX reference
    r1, r2, r3, r4, rh = ref_model(
        stage1inp, stage2inp, stage3inp, stage4inp, uid, emb, stage_params)
    import numpy as np
    np.testing.assert_allclose(np.asarray(jnp.concatenate(s1o, 1)), np.asarray(r1), rtol=1e-5, atol=1e-5)
    np.testing.assert_allclose(np.asarray(jnp.concatenate(s2o, 1)), np.asarray(r2), rtol=1e-5, atol=1e-5)
    np.testing.assert_allclose(np.asarray(jnp.concatenate(s3o, 1)), np.asarray(r3), rtol=1e-5, atol=1e-5)
    np.testing.assert_allclose(np.asarray(jnp.concatenate(s4o, 1)), np.asarray(r4), rtol=1e-5, atol=1e-5)
    np.testing.assert_allclose(np.asarray(hidden), np.asarray(rh), rtol=1e-5, atol=1e-5)

    print("KERNEL_OK")
</pallas_src>

<mosaic_0001>
module attributes {stable_mosaic.version = 11 : i64} {
  func.func @subj_kernel(%arg0: i32, %arg1: memref<8x2xf32, #tpu.memory_space<vmem>>, %arg2: memref<8x1xf32, #tpu.memory_space<vmem>>, %arg3: memref<8x1xf32, #tpu.memory_space<vmem>>, %arg4: memref<8x1xf32, #tpu.memory_space<vmem>>, %arg5: memref<8x2xf32, #tpu.memory_space<vmem>>, %arg6: memref<240x16xf32, #tpu.memory_space<vmem>>, %arg7: memref<8x26xf32, #tpu.memory_space<vmem>>) attributes {dimension_semantics = [#tpu.dimension_semantics<parallel>], iteration_bounds = array<i64: 1>, scalar_prefetch = 0 : i64, scratch_operands = 0 : i64, tpu.core_type = #tpu.core_type<tc>, window_params = [{transform_indices = @transform_0, window_bounds = array<i64: 8, 2>}, {transform_indices = @transform_1, window_bounds = array<i64: 8, 1>}, {transform_indices = @transform_2, window_bounds = array<i64: 8, 1>}, {transform_indices = @transform_3, window_bounds = array<i64: 8, 1>}, {transform_indices = @transform_4, window_bounds = array<i64: 8, 2>}, {pipeline_mode = #tpu.pipeline_mode<synchronous>, transform_indices = @transform_5, window_bounds = array<i64: 240, 16>}, {transform_indices = @transform_6, window_bounds = array<i64: 8, 26>}]} {
    %c0 = arith.constant 0 : index
    %c0_0 = arith.constant 0 : index
    %0 = vector.load %arg1[%c0, %c0_0] : memref<8x2xf32, #tpu.memory_space<vmem>>, vector<8x2xf32>
    %c0_1 = arith.constant 0 : index
    %c0_2 = arith.constant 0 : index
    %1 = vector.load %arg2[%c0_1, %c0_2] : memref<8x1xf32, #tpu.memory_space<vmem>>, vector<8x1xf32>
    %c0_3 = arith.constant 0 : index
    %c0_4 = arith.constant 0 : index
    %2 = vector.load %arg3[%c0_3, %c0_4] : memref<8x1xf32, #tpu.memory_space<vmem>>, vector<8x1xf32>
    %c0_5 = arith.constant 0 : index
    %c0_6 = arith.constant 0 : index
    %3 = vector.load %arg4[%c0_5, %c0_6] : memref<8x1xf32, #tpu.memory_space<vmem>>, vector<8x1xf32>
    %c0_7 = arith.constant 0 : index
    %c0_8 = arith.constant 0 : index
    %4 = vector.load %arg5[%c0_7, %c0_8] : memref<8x2xf32, #tpu.memory_space<vmem>>, vector<8x2xf32>
    %c0_9 = arith.constant 0 : index
    %c0_10 = arith.constant 0 : index
    %5 = vector.load %arg6[%c0_9, %c0_10] : memref<240x16xf32, #tpu.memory_space<vmem>>, vector<2x10xf32>
    %cst = arith.constant dense<0.000000e+00> : vector<8x10xf32>
    %6 = tpu.matmul %4, %5, %cst {dimension_numbers = #tpu.dot_dimension_numbers<[1], [0], [0], [1], [0, 0, 1, 1], [], []>} : vector<8x2xf32>, vector<2x10xf32>, vector<8x10xf32> -> vector<8x10xf32>
    %c168 = arith.constant 168 : index
    %c0_11 = arith.constant 0 : index
    %7 = vector.load %arg6[%c168, %c0_11] : memref<240x16xf32, #tpu.memory_space<vmem>>, vector<1x10xf32>
    %8 = vector.broadcast %7 : vector<1x10xf32> to vector<8x10xf32>
    %9 = arith.addf %6, %8 : vector<8x10xf32>
    %10 = math.tanh %9 : vector<8x10xf32>
    %c8 = arith.constant 8 : index
    %c0_12 = arith.constant 0 : index
    %11 = vector.load %arg6[%c8, %c0_12] : memref<240x16xf32, #tpu.memory_space<vmem>>, vector<2x10xf32>
    %cst_13 = arith.constant dense<0.000000e+00> : vector<8x10xf32>
    %12 = tpu.matmul %0, %11, %cst_13 {dimension_numbers = #tpu.dot_dimension_numbers<[1], [0], [0], [1], [0, 0, 1, 1], [], []>} : vector<8x2xf32>, vector<2x10xf32>, vector<8x10xf32> -> vector<8x10xf32>
    %c16 = arith.constant 16 : index
    %c0_14 = arith.constant 0 : index
    %13 = vector.load %arg6[%c16, %c0_14] : memref<240x16xf32, #tpu.memory_space<vmem>>, vector<10x10xf32>
    %cst_15 = arith.constant dense<0.000000e+00> : vector<8x10xf32>
    %14 = tpu.matmul %10, %13, %cst_15 {dimension_numbers = #tpu.dot_dimension_numbers<[1], [0], [0], [1], [0, 0, 1, 1], [], []>} : vector<8x10xf32>, vector<10x10xf32>, vector<8x10xf32> -> vector<8x10xf32>
    %15 = arith.addf %12, %14 : vector<8x10xf32>
    %c176 = arith.constant 176 : index
    %c0_16 = arith.constant 0 : index
    %16 = vector.load %arg6[%c176, %c0_16] : memref<240x16xf32, #tpu.memory_space<vmem>>, vector<1x10xf32>
    %17 = vector.broadcast %16 : vector<1x10xf32> to vector<8x10xf32>
    %18 = arith.addf %15, %17 : vector<8x10xf32>
    %19 = math.tanh %18 : vector<8x10xf32>
    %c32 = arith.constant 32 : index
    %c0_17 = arith.constant 0 : index
    %20 = vector.load %arg6[%c32, %c0_17] : memref<240x16xf32, #tpu.memory_space<vmem>>, vector<10x14xf32>
    %cst_18 = arith.constant dense<0.000000e+00> : vector<8x14xf32>
    %21 = tpu.matmul %19, %20, %cst_18 {dimension_numbers = #tpu.dot_dimension_numbers<[1], [0], [0], [1], [0, 0, 1, 1], [], []>} : vector<8x10xf32>, vector<10x14xf32>, vector<8x14xf32> -> vector<8x14xf32>
    %c184 = arith.constant 184 : index
    %c0_19 = arith.constant 0 : index
    %22 = vector.load %arg6[%c184, %c0_19] : memref<240x16xf32, #tpu.memory_space<vmem>>, vector<1x14xf32>
    %23 = vector.broadcast %22 : vector<1x14xf32> to vector<8x14xf32>
    %24 = arith.addf %21, %23 : vector<8x14xf32>
    %25 = vector.extract_strided_slice %24 {offsets = [0, 0], sizes = [8, 4], strides = [1, 1]} : vector<8x14xf32> to vector<8x4xf32>
    %c0_20 = arith.constant 0 : index
    %c0_21 = arith.constant 0 : index
    %26 = vector.load %arg7[%c0_20, %c0_21] : memref<8x26xf32, #tpu.memory_space<vmem>>, vector<8x4xf32>
    tpu.vector_store %arg7[%c0_20, %c0_21], %25 {strides = array<i32>} : memref<8x26xf32, #tpu.memory_space<vmem>>, vector<8x4xf32>,
    %27 = vector.extract_strided_slice %24 {offsets = [0, 4], sizes = [8, 10], strides = [1, 1]} : vector<8x14xf32> to vector<8x10xf32>
    %28 = math.tanh %27 : vector<8x10xf32>
    %c48 = arith.constant 48 : index
    %c0_22 = arith.constant 0 : index
    %29 = vector.load %arg6[%c48, %c0_22] : memref<240x16xf32, #tpu.memory_space<vmem>>, vector<1x10xf32>
    %cst_23 = arith.constant dense<0.000000e+00> : vector<8x10xf32>
    %30 = tpu.matmul %1, %29, %cst_23 {dimension_numbers = #tpu.dot_dimension_numbers<[1], [0], [0], [1], [0, 0, 1, 1], [], []>} : vector<8x1xf32>, vector<1x10xf32>, vector<8x10xf32> -> vector<8x10xf32>
    %c56 = arith.constant 56 : index
    %c0_24 = arith.constant 0 : index
    %31 = vector.load %arg6[%c56, %c0_24] : memref<240x16xf32, #tpu.memory_space<vmem>>, vector<10x10xf32>
    %cst_25 = arith.constant dense<0.000000e+00> : vector<8x10xf32>
    %32 = tpu.matmul %28, %31, %cst_25 {dimension_numbers = #tpu.dot_dimension_numbers<[1], [0], [0], [1], [0, 0, 1, 1], [], []>} : vector<8x10xf32>, vector<10x10xf32>, vector<8x10xf32> -> vector<8x10xf32>
    %33 = arith.addf %30, %32 : vector<8x10xf32>
    %c192 = arith.constant 192 : index
    %c0_26 = arith.constant 0 : index
    %34 = vector.load %arg6[%c192, %c0_26] : memref<240x16xf32, #tpu.memory_space<vmem>>, vector<1x10xf32>
    %35 = vector.broadcast %34 : vector<1x10xf32> to vector<8x10xf32>
    %36 = arith.addf %33, %35 : vector<8x10xf32>
    %37 = math.tanh %36 : vector<8x10xf32>
    %c72 = arith.constant 72 : index
    %c0_27 = arith.constant 0 : index
    %38 = vector.load %arg6[%c72, %c0_27] : memref<240x16xf32, #tpu.memory_space<vmem>>, vector<10x16xf32>
    %cst_28 = arith.constant dense<0.000000e+00> : vector<8x16xf32>
    %39 = tpu.matmul %37, %38, %cst_28 {dimension_numbers = #tpu.dot_dimension_numbers<[1], [0], [0], [1], [0, 0, 1, 1], [], []>} : vector<8x10xf32>, vector<10x16xf32>, vector<8x16xf32> -> vector<8x16xf32>
    %c200 = arith.constant 200 : index
    %c0_29 = arith.constant 0 : index
    %40 = vector.load %arg6[%c200, %c0_29] : memref<240x16xf32, #tpu.memory_space<vmem>>, vector<1x16xf32>
    %41 = vector.broadcast %40 : vector<1x16xf32> to vector<8x16xf32>
    %42 = arith.addf %39, %41 : vector<8x16xf32>
    %43 = vector.extract_strided_slice %42 {offsets = [0, 0], sizes = [8, 6], strides = [1, 1]} : vector<8x16xf32> to vector<8x6xf32>
    %c0_30 = arith.constant 0 : index
    %c4 = arith.constant 4 : index
    %44 = vector.load %arg7[%c0_30, %c4] : memref<8x26xf32, #tpu.memory_space<vmem>>, vector<8x6xf32>
    tpu.vector_store %arg7[%c0_30, %c4], %43 {strides = array<i32>} : memref<8x26xf32, #tpu.memory_space<vmem>>, vector<8x6xf32>,
    %45 = vector.extract_strided_slice %42 {offsets = [0, 6], sizes = [8, 10], strides = [1, 1]} : vector<8x16xf32> to vector<8x10xf32>
    %46 = math.tanh %45 : vector<8x10xf32>
    %c88 = arith.constant 88 : index
    %c0_31 = arith.constant 0 : index
    %47 = vector.load %arg6[%c88, %c0_31] : memref<240x16xf32, #tpu.memory_space<vmem>>, vector<1x10xf32>
    %cst_32 = arith.constant dense<0.000000e+00> : vector<8x10xf32>
    %48 = tpu.matmul %2, %47, %cst_32 {dimension_numbers = #tpu.dot_dimension_numbers<[1], [0], [0], [1], [0, 0, 1, 1], [], []>} : vector<8x1xf32>, vector<1x10xf32>, vector<8x10xf32> -> vector<8x10xf32>
    %c96 = arith.constant 96 : index
    %c0_33 = arith.constant 0 : index
    %49 = vector.load %arg6[%c96, %c0_33] : memref<240x16xf32, #tpu.memory_space<vmem>>, vector<10x10xf32>
    %cst_34 = arith.constant dense<0.000000e+00> : vector<8x10xf32>
    %50 = tpu.matmul %46, %49, %cst_34 {dimension_numbers = #tpu.dot_dimension_numbers<[1], [0], [0], [1], [0, 0, 1, 1], [], []>} : vector<8x10xf32>, vector<10x10xf32>, vector<8x10xf32> -> vector<8x10xf32>
    %51 = arith.addf %48, %50 : vector<8x10xf32>
    %c208 = arith.constant 208 : index
    %c0_35 = arith.constant 0 : index
    %52 = vector.load %arg6[%c208, %c0_35] : memref<240x16xf32, #tpu.memory_space<vmem>>, vector<1x10xf32>
    %53 = vector.broadcast %52 : vector<1x10xf32> to vector<8x10xf32>
    %54 = arith.addf %51, %53 : vector<8x10xf32>
    %55 = math.tanh %54 : vector<8x10xf32>
    %c112 = arith.constant 112 : index
    %c0_36 = arith.constant 0 : index
    %56 = vector.load %arg6[%c112, %c0_36] : memref<240x16xf32, #tpu.memory_space<vmem>>, vector<10x14xf32>
    %cst_37 = arith.constant dense<0.000000e+00> : vector<8x14xf32>
    %57 = tpu.matmul %55, %56, %cst_37 {dimension_numbers = #tpu.dot_dimension_numbers<[1], [0], [0], [1], [0, 0, 1, 1], [], []>} : vector<8x10xf32>, vector<10x14xf32>, vector<8x14xf32> -> vector<8x14xf32>
    %c216 = arith.constant 216 : index
    %c0_38 = arith.constant 0 : index
    %58 = vector.load %arg6[%c216, %c0_38] : memref<240x16xf32, #tpu.memory_space<vmem>>, vector<1x14xf32>
    %59 = vector.broadcast %58 : vector<1x14xf32> to vector<8x14xf32>
    %60 = arith.addf %57, %59 : vector<8x14xf32>
    %61 = vector.extract_strided_slice %60 {offsets = [0, 0], sizes = [8, 4], strides = [1, 1]} : vector<8x14xf32> to vector<8x4xf32>
    %c0_39 = arith.constant 0 : index
    %c10 = arith.constant 10 : index
    %62 = vector.load %arg7[%c0_39, %c10] : memref<8x26xf32, #tpu.memory_space<vmem>>, vector<8x4xf32>
    tpu.vector_store %arg7[%c0_39, %c10], %61 {strides = array<i32>} : memref<8x26xf32, #tpu.memory_space<vmem>>, vector<8x4xf32>,
    %63 = vector.extract_strided_slice %60 {offsets = [0, 4], sizes = [8, 10], strides = [1, 1]} : vector<8x14xf32> to vector<8x10xf32>
    %64 = math.tanh %63 : vector<8x10xf32>
    %c128 = arith.constant 128 : index
    %c0_40 = arith.constant 0 : index
    %65 = vector.load %arg6[%c128, %c0_40] : memref<240x16xf32, #tpu.memory_space<vmem>>, vector<1x10xf32>
    %cst_41 = arith.constant dense<0.000000e+00> : vector<8x10xf32>
    %66 = tpu.matmul %3, %65, %cst_41 {dimension_numbers = #tpu.dot_dimension_numbers<[1], [0], [0], [1], [0, 0, 1, 1], [], []>} : vector<8x1xf32>, vector<1x10xf32>, vector<8x10xf32> -> vector<8x10xf32>
    %c136 = arith.constant 136 : index
    %c0_42 = arith.constant 0 : index
    %67 = vector.load %arg6[%c136, %c0_42] : memref<240x16xf32, #tpu.memory_space<vmem>>, vector<10x10xf32>
    %cst_43 = arith.constant dense<0.000000e+00> : vector<8x10xf32>
    %68 = tpu.matmul %64, %67, %cst_43 {dimension_numbers = #tpu.dot_dimension_numbers<[1], [0], [0], [1], [0, 0, 1, 1], [], []>} : vector<8x10xf32>, vector<10x10xf32>, vector<8x10xf32> -> vector<8x10xf32>
    %69 = arith.addf %66, %68 : vector<8x10xf32>
    %c224 = arith.constant 224 : index
    %c0_44 = arith.constant 0 : index
    %70 = vector.load %arg6[%c224, %c0_44] : memref<240x16xf32, #tpu.memory_space<vmem>>, vector<1x10xf32>
    %71 = vector.broadcast %70 : vector<1x10xf32> to vector<8x10xf32>
    %72 = arith.addf %69, %71 : vector<8x10xf32>
    %73 = math.tanh %72 : vector<8x10xf32>
    %c152 = arith.constant 152 : index
    %c0_45 = arith.constant 0 : index
    %74 = vector.load %arg6[%c152, %c0_45] : memref<240x16xf32, #tpu.memory_space<vmem>>, vector<10x2xf32>
    %cst_46 = arith.constant dense<0.000000e+00> : vector<8x2xf32>
    %75 = tpu.matmul %73, %74, %cst_46 {dimension_numbers = #tpu.dot_dimension_numbers<[1], [0], [0], [1], [0, 0, 1, 1], [], []>} : vector<8x10xf32>, vector<10x2xf32>, vector<8x2xf32> -> vector<8x2xf32>
    %c232 = arith.constant 232 : index
    %c0_47 = arith.constant 0 : index
    %76 = vector.load %arg6[%c232, %c0_47] : memref<240x16xf32, #tpu.memory_space<vmem>>, vector<1x2xf32>
    %77 = vector.broadcast %76 : vector<1x2xf32> to vector<8x2xf32>
    %78 = arith.addf %75, %77 : vector<8x2xf32>
    %c0_48 = arith.constant 0 : index
    %c14 = arith.constant 14 : index
    %79 = vector.load %arg7[%c0_48, %c14] : memref<8x26xf32, #tpu.memory_space<vmem>>, vector<8x2xf32>
    tpu.vector_store %arg7[%c0_48, %c14], %78 {strides = array<i32>} : memref<8x26xf32, #tpu.memory_space<vmem>>, vector<8x2xf32>,
    %c0_49 = arith.constant 0 : index
    %c16_50 = arith.constant 16 : index
    %80 = vector.load %arg7[%c0_49, %c16_50] : memref<8x26xf32, #tpu.memory_space<vmem>>, vector<8x10xf32>
    tpu.vector_store %arg7[%c0_49, %c16_50], %73 {strides = array<i32>} : memref<8x26xf32, #tpu.memory_space<vmem>>, vector<8x10xf32>,
    return
  }
  func.func @transform_0(%arg0: i32) -> (i32, i32) {
    %c0_i32 = arith.constant 0 : i32
    %c0_i32_0 = arith.constant 0 : i32
    return %arg0, %c0_i32 : i32, i32
  }
  func.func @transform_1(%arg0: i32) -> (i32, i32) {
    %c0_i32 = arith.constant 0 : i32
    %c0_i32_0 = arith.constant 0 : i32
    return %arg0, %c0_i32 : i32, i32
  }
  func.func @transform_2(%arg0: i32) -> (i32, i32) {
    %c0_i32 = arith.constant 0 : i32
    %c0_i32_0 = arith.constant 0 : i32
    return %arg0, %c0_i32 : i32, i32
  }
  func.func @transform_3(%arg0: i32) -> (i32, i32) {
    %c0_i32 = arith.constant 0 : i32
    %c0_i32_0 = arith.constant 0 : i32
    return %arg0, %c0_i32 : i32, i32
  }
  func.func @transform_4(%arg0: i32) -> (i32, i32) {
    %c0_i32 = arith.constant 0 : i32
    %c0_i32_0 = arith.constant 0 : i32
    return %arg0, %c0_i32 : i32, i32
  }
  func.func @transform_5(%arg0: i32) -> (i32, i32) {
    %c0_i32 = arith.constant 0 : i32
    %c0_i32_0 = arith.constant 0 : i32
    %c0_i32_1 = arith.constant 0 : i32
    return %c0_i32, %c0_i32_0 : i32, i32
  }
  func.func @transform_6(%arg0: i32) -> (i32, i32) {
    %c0_i32 = arith.constant 0 : i32
    %c0_i32_0 = arith.constant 0 : i32
    return %arg0, %c0_i32 : i32, i32
  }
}

</mosaic_0001>

<bundles_post_ra>
// kernel: subj_model.1
= control target key start
LH: loop header
LB: loop body
LE: loop exit
PB: predicated region body
PF: predicated region fallthrough
CT: control target
= control target key end

     0   :  { %vm38_vm0 = vcmask 1041408   ;;  %v1342_v0 = vmov 0.0   ;;  %vm1343_vm1 = vmmov 0   ;;  %vm34_vm2 = vcmask 15360   ;;  %s1346_s25 = smov 124   ;;  %s1348_s8 = smov 10   ;;  %s1587_s5 = inlined_call_operand.vmem [shape: f32[240,16], index: 5, kind: input, shape index: {}]   ;;  %s1588_s4 = inlined_call_operand.vmem [shape: f32[8,2], index: 4, kind: input, shape index: {}]   ;;  %s1589_s0 = inlined_call_operand.vmem [shape: f32[8,2], index: 0, kind: input, shape index: {}]   ;;  %s1590_s1 = inlined_call_operand.vmem [shape: f32[8,1], index: 1, kind: input, shape index: {}]   ;;  %s1591_s6 = inlined_call_operand.vmem [shape: f32[8,26], index: 6, kind: output, shape index: {}]   ;;  %s1592_s2 = inlined_call_operand.vmem [shape: f32[8,1], index: 2, kind: input, shape index: {}]   ;;  %s1593_s3 = inlined_call_operand.vmem [shape: f32[8,1], index: 3, kind: input, shape index: {}]  }
   0x1   :  { %1203 = vmatprep.subr.mxu0 %v1342_v0  ;;  %v28_v1 = vld [vmem:[%s1587_s5] sm:$0x3]  ;;  %1205 = vmatprep.mubr.msk.f32.mxu0 %vm1343_vm1, %v1342_v0  ;;  %vm1344_vm3 = vmmov 1   ;;  %v113_v4 = vld [vmem:[%s1587_s5 + $0x8] sm:$0x3]  ;;  %v114_v5 = vld [vmem:[%s1587_s5 + $0x10] sm:$0xff] }
   0x2   :  { %v27_v2 = vld [vmem:[%s1588_s4] sm:$0xff]  ;;  %1204 = vmatpush3.msk.msra.mxu0 %vm38_vm0, %v28_v1  ;;  %1212 = vmatprep.mubr.msk.f32.mxu1 %vm1343_vm1, %v1342_v0  ;;  %vm1404_vm4 = vmpackc.low %vm38_vm0, %vm1344_vm3  ;;  %v115_v6 = vld [vmem:[%s1587_s5 + $0x18] sm:$0x3]  ;;  %v1345_v7 = vmov 0.0|0.0   ;;  %vm116_vm5 = vcmask 80896   ;;  %vm447_vm6 = vcmask 1040384  }
   0x3   :  { %1206 = vmatmul.mubr.msk.f32.vlgmr.msra.gmra.mrb[0].mxu0 %vm34_vm2, %v27_v2  ;;  %1215 = vmatprep.subr.mxu0 %v1342_v0  ;;  %v1285_v8 = vpack.c.bf16 %v115_v6, %v114_v5  ;;  %v23_v9 = vld [vmem:[%s1589_s0] sm:$0xff]  ;;  %v1134_v10 = vld [vmem:[%s1587_s5 + $0xa8] ss:$0 sm:$0xff]  ;;  %v1141_v21 = vld [vmem:[%s1587_s5 + $0xb0] ss:$0 sm:$0xff]  ;;  %vm443_vm7 = vcmask 7168  }
   0x4   :  { %1217 = vmatprep.mubr.msk.f32.mxu0 %vm1343_vm1, %v1342_v0  ;;  %1284 = vmatprep.subr.bf16.mxu1 %v1345_v7  ;;  %v276_v17 = vld [vmem:[%s1587_s5 + $0x20] sm:$0xff]  ;;  %v277_v18 = vld [vmem:[%s1587_s5 + $0x28] sm:$0x3]  ;;  %v363_v26 = vld [vmem:[%s1587_s5 + $0x38] sm:$0xff]  ;;  %vm359_vm8 = vcmask 31744   ;;  %vm615_vm9 = vcmask 80928  }
   0x5   :  { %1216 = vmatpush3.msk.msra.mxu0 %vm38_vm0, %v113_v4  ;;  %1287 = vmatpush3.bf16.msk.msra.mxu1 %vm1404_vm4, %v1285_v8  ;;  %v1289_v19 = vpack.c.bf16 %v277_v18, %v276_v17  ;;  %v364_v27 = vld [vmem:[%s1587_s5 + $0x40] sm:$0x3]  ;;  %v362_v28 = vld [vmem:[%s1587_s5 + $0x30] sm:$0x1]  ;;  %v1142_v31 = vld [vmem:[%s1587_s5 + $0xb8] ss:$0 sm:$0xff] }
   0x6   :  { %1292 = vmatprep.subr.bf16.mxu0 %v1345_v7  ;;  %1288 = vmatprep.subr.bf16.mxu1 %v1345_v7  ;;  %v1293_v29 = vpack.c.bf16 %v364_v27, %v363_v26  ;;  %v24_v30 = vld [vmem:[%s1590_s1] sm:$0xff]  ;;  %v528_v39 = vld [vmem:[%s1587_s5 + $0x48] sm:$0xff]  ;;  %v529_v40 = vld [vmem:[%s1587_s5 + $0x50] sm:$0x3]  ;;  %vm869_vm10 = vcmask 113744   ;;  %s1351_s19 = smov 14  }
   0x7   :  { %1218 = vmatmul.mubr.msk.f32.vlgmr.msra.gmra.mrb[2].mxu0 %vm34_vm2, %v23_v9  ;;  %v1297_v41 = vpack.c.bf16 %v529_v40, %v528_v39  ;;  %v1149_v43 = vld [vmem:[%s1587_s5 + $0xc0] ss:$0 sm:$0xff]  ;;  %v620_v49 = vld [vmem:[%s1587_s5 + $0x68] sm:$0x3]  ;;  %v618_v50 = vld [vmem:[%s1587_s5 + $0x58] sm:$0x1] }
   0x8   :  { %1231 = vmatprep.mubr.msk.f32.mxu0 %vm1343_vm1, %v1342_v0  ;;  %1295 = vmatpush3.bf16.msk.msra.mxu0 %vm1404_vm4, %v1293_v29  ;;  %v619_v48 = vld [vmem:[%s1587_s5 + $0x60] sm:$0xff]  ;;  %v1150_v53 = vld [vmem:[%s1587_s5 + $0xc8] ss:$0 sm:$0xff]  ;;  %v782_v61 = vld [vmem:[%s1587_s5 + $0x70] sm:$0xff]  ;;  %vm1123_vm11 = vcmask 130160   ;;  %vm1128_vm12 = vcmask 212096  }
   0x9   :  { %1296 = vmatprep.subr.bf16.mxu0 %v1345_v7  ;;  %v1301_v51 = vpack.c.bf16 %v620_v49, %v619_v48  ;;  %v25_v52 = vld [vmem:[%s1592_s2] sm:$0xff]  ;;  %s1347_s2 = smov 122   ;;  %v783_v62 = vld [vmem:[%s1587_s5 + $0x78] sm:$0x3]  ;;  %v1157_v2 = vld [vmem:[%s1587_s5 + $0xd0] ss:$0 sm:$0xff] }
   0xa   :  { %v1305_v63 = vpack.c.bf16 %v783_v62, %v782_v61  ;;  %v873_v9 = vld [vmem:[%s1587_s5 + $0x88] sm:$0xff]  ;;  %v1165_v26 = vld [vmem:[%s1587_s5 + $0xe0] ss:$0 sm:$0xff] }
  0xd6   :  { %v108_v11 = vpop.f32.mrb[0].mxu0 }
  0xd7   :  { %v109_v12 = vadd.f32 %v1134_v10, %v108_v11  ;;  %v1207_v13 = vpop.f32.mrb[1].mxu0  ;;  %v874_v10 = vld [vmem:[%s1587_s5 + $0x90] sm:$0x3]  ;;  %v872_v11 = vld [vmem:[%s1587_s5 + $0x80] sm:$0x1] }
  0xd8   :  { %v26_v13 = vld [vmem:[%s1593_s3] sm:$0xff]  ;;  %s1349_s3 = smov 4  }
  0xd9   :  { %1326 = vtanh.f32 %v109_v12  ;;  %v1309_v12 = vpack.c.bf16 %v874_v10, %v873_v9 }
  0xda   :  { %v265_v15 = vpop.f32.mrb[2].mxu0 }
  0xdb   :  { %v1219_v16 = vpop.f32.mrb[3].mxu0 }
  0xe3   :  { %v1327_v14 = vpop.eup %1326 }
  0xe4   :  { %1213 = vmatmul.mubr.msk.f32.vlgmr.msra.gmra.mrb[0].mxu1 %vm116_vm5, %v1327_v14  ;;  %v1158_v14 = vld [vmem:[%s1587_s5 + $0xd8] ss:$0 sm:$0xff] }
  0xe5   :  { %1224 = vmatprep.mubr.msk.f32.mxu1 %vm1343_vm1, %v1342_v0  ;;  %1291 = vmatpush3.bf16.msk.msra.mxu1 %vm1404_vm4, %v1289_v19 }
  0xe6   :  { %1234 = vmatprep.subr.mxu1 %v1342_v0 }
 0x1b7   :  { %v189_v20 = vpop.f32.mrb[0].mxu1 }
 0x1b8   :  { %v266_v22 = vadd.f32 %v265_v15, %v189_v20  ;;  %v1214_v23 = vpop.f32.mrb[1].mxu1 }
 0x1b9   :  { %v1036_v23 = vld [vmem:[%s1587_s5 + $0x98] sm:$0xff] }
 0x1ba   :  { %v274_v24 = vadd.f32 %v1141_v21, %v266_v22 }
 0x1bc   :  { %1328 = vtanh.f32 %v274_v24 }
 0x1c6   :  { %v1329_v25 = vpop.eup %1328 }
 0x1c7   :  { %1225 = vmatmul.mubr.msk.f32.vlgmr.msra.gmra.mrb[2].mxu1 %vm116_vm5, %v1329_v25 }
 0x1c8   :  { %1236 = vmatprep.mubr.msk.f32.mxu1 %vm1343_vm1, %v1342_v0  ;;  %1235 = vmatpush3.msk.msra.mxu1 %vm447_vm6, %v362_v28 }
 0x1c9   :  { %1300 = vmatprep.subr.bf16.mxu1 %v1345_v7 }
 0x1cb   :  { %1237 = vmatmul.mubr.msk.f32.vlgmr.msra.gmra.mrb[4].mxu1 %vm443_vm7, %v24_v30 }
 0x1cc   :  { %1250 = vmatprep.mubr.msk.f32.mxu1 %vm1343_vm1, %v1342_v0  ;;  %1303 = vmatpush3.bf16.msk.msra.mxu1 %vm1404_vm4, %v1301_v51 }
 0x1cd   :  { %1304 = vmatprep.subr.bf16.mxu1 %v1345_v7 }
 0x29a   :  { %v355_v32 = vpop.f32.mrb[2].mxu1 }
 0x29b   :  { %v356_v33 = vadd.f32 %v1142_v31, %v355_v32  ;;  %v1226_v34 = vpop.f32.mrb[3].mxu1  ;;  %v1166_v31 = vld [vmem:[%s1587_s5 + $0xe8] ss:$0 sm:$0xff] }
 0x29d   :  { %360 = vst.msk [vmem:[%s1591_s6] sm:$0xff] %vm359_vm8, %v356_v33  ;;  %1330 = vtanh.f32 %v356_v33 }
 0x29e   :  { %v517_v36 = vpop.f32.mrb[4].mxu1 }
 0x29f   :  { %v1238_v37 = vpop.f32.mrb[5].mxu1 }
 0x2a7   :  { %v1331_v35 = vpop.eup %1330 }
 0x2a8   :  { %366 = vrot.lane.b32.xlu0 %v1331_v35, %s1346_s25 }
 0x31a   :  { %v367_v38 = vpop.permute.xlu0 %366 }
 0x31b   :  { %1232 = vmatmul.mubr.msk.f32.vlgmr.msra.gmra.mrb[4].mxu0 %vm116_vm5, %v367_v38 }
 0x31c   :  { %1243 = vmatprep.mubr.msk.f32.mxu0 %vm1343_vm1, %v1342_v0  ;;  %1299 = vmatpush3.bf16.msk.msra.mxu0 %vm1404_vm4, %v1297_v41 }
 0x31d   :  { %1253 = vmatprep.subr.mxu0 %v1342_v0 }
 0x3ee   :  { %v439_v42 = vpop.f32.mrb[4].mxu0 }
 0x3ef   :  { %v518_v44 = vadd.f32 %v517_v36, %v439_v42  ;;  %v1233_v45 = vpop.f32.mrb[5].mxu0 }
 0x3f1   :  { %v526_v46 = vadd.f32 %v1149_v43, %v518_v44 }
 0x3f3   :  { %1332 = vtanh.f32 %v526_v46 }
 0x3fd   :  { %v1333_v47 = vpop.eup %1332 }
 0x3fe   :  { %1244 = vmatmul.mubr.msk.f32.vlgmr.msra.gmra.mrb[6].mxu0 %vm116_vm5, %v1333_v47 }
 0x3ff   :  { %1255 = vmatprep.mubr.msk.f32.mxu0 %vm1343_vm1, %v1342_v0  ;;  %1254 = vmatpush3.msk.msra.mxu0 %vm447_vm6, %v618_v50 }
 0x400   :  { %1308 = vmatprep.subr.bf16.mxu0 %v1345_v7 }
 0x402   :  { %1256 = vmatmul.mubr.msk.f32.vlgmr.msra.gmra.mrb[8].mxu0 %vm443_vm7, %v25_v52 }
 0x403   :  { %1269 = vmatprep.mubr.msk.f32.mxu0 %vm1343_vm1, %v1342_v0  ;;  %1311 = vmatpush3.bf16.msk.msra.mxu0 %vm1404_vm4, %v1309_v12 }
 0x404   :  { %1312 = vmatprep.subr.bf16.mxu0 %v1345_v7 }
 0x4d1   :  { %v607_v54 = vpop.f32.mrb[6].mxu0 }
 0x4d2   :  { %v608_v55 = vadd.f32 %v1150_v53, %v607_v54  ;;  %v1245_v56 = vpop.f32.mrb[7].mxu0 }
 0x4d4   :  { %1334 = vtanh.f32 %v608_v55 }
 0x4d5   :  { %v771_v58 = vpop.f32.mrb[8].mxu0 }
 0x4d6   :  { %v1257_v59 = vpop.f32.mrb[9].mxu0 }
 0x4de   :  { %v1335_v57 = vpop.eup %1334 }
 0x4df   :  { %622 = vrot.lane.b32.xlu0 %v1335_v57, %s1347_s2  ;;  %s1350_s2 = smov 16  }
 0x551   :  { %v623_v60 = vpop.permute.xlu0 %622 }
 0x552   :  { %1251 = vmatmul.mubr.msk.f32.vlgmr.msra.gmra.mrb[6].mxu1 %vm116_vm5, %v623_v60 }
 0x553   :  { %1262 = vmatprep.mubr.msk.f32.mxu1 %vm1343_vm1, %v1342_v0  ;;  %1307 = vmatpush3.bf16.msk.msra.mxu1 %vm1404_vm4, %v1305_v63 }
 0x554   :  { %1272 = vmatprep.subr.mxu1 %v1342_v0 }
 0x625   :  { %v695_v1 = vpop.f32.mrb[6].mxu1 }
 0x626   :  { %v772_v4 = vadd.f32 %v771_v58, %v695_v1  ;;  %v1252_v5 = vpop.f32.mrb[7].mxu1 }
 0x628   :  { %v780_v6 = vadd.f32 %v1157_v2, %v772_v4 }
 0x62a   :  { %1336 = vtanh.f32 %v780_v6 }
 0x634   :  { %v1337_v8 = vpop.eup %1336 }
 0x635   :  { %1263 = vmatmul.mubr.msk.f32.vlgmr.msra.gmra.mrb[8].mxu1 %vm116_vm5, %v1337_v8 }
 0x636   :  { %1274 = vmatprep.mubr.msk.f32.mxu1 %vm1343_vm1, %v1342_v0  ;;  %1273 = vmatpush3.msk.msra.mxu1 %vm447_vm6, %v872_v11 }
 0x639   :  { %1275 = vmatmul.mubr.msk.f32.vlgmr.msra.gmra.mrb[10].mxu1 %vm443_vm7, %v26_v13 }
 0x708   :  { %v861_v15 = vpop.f32.mrb[8].mxu1 }
 0x709   :  { %v862_v16 = vadd.f32 %v1158_v14, %v861_v15  ;;  %v1264_v17 = vpop.f32.mrb[9].mxu1 }
 0x70b   :  { %1338 = vtanh.f32 %v862_v16  ;;  %866 = vrot.lane.b32.xlu0 %v862_v16, %s1348_s8 }
 0x70c   :  { %v1025_v21 = vpop.f32.mrb[10].mxu1 }
 0x70d   :  { %v1276_v22 = vpop.f32.mrb[11].mxu1 }
 0x715   :  { %v1339_v18 = vpop.eup %1338 }
 0x716   :  { %876 = vrot.lane.b32.xlu1 %v1339_v18, %s1346_s25 }
 0x71a   :  { %612 = vrot.lane.b32.xlu1 %v608_v55, %s1349_s3 }
 0x77d   :  { %v867_v20 = vpop.permute.xlu0 %866 }
 0x788   :  { %v877_v19 = vpop.permute.xlu1 %876 }
 0x789   :  { %1270 = vmatmul.mubr.msk.f32.vlgmr.msra.gmra.mrb[10].mxu0 %vm116_vm5, %v877_v19 }
 0x78a   :  { %1281 = vmatprep.mubr.msk.f32.mxu0 %vm1343_vm1, %v1342_v0  ;;  %v1037_v0 = vld [vmem:[%s1587_s5 + $0xa0] sm:$0x3] }
 0x78b   :  { %v1313_v24 = vpack.c.bf16 %v1037_v0, %v1036_v23 }
 0x78c   :  { %v613_v7 = vpop.permute.xlu1 %612 }
 0x78d   :  { %616 = vst.msk [vmem:[%s1591_s6] sm:$0xff] %vm615_vm9, %v613_v7  ;;  %1315 = vmatpush3.bf16.msk.msra.mxu0 %vm1404_vm4, %v1313_v24 }
 0x78e   :  { %870 = vst.msk [vmem:[%s1591_s6] sm:$0xff] %vm869_vm10, %v867_v20 }
 0x85c   :  { %v949_v25 = vpop.f32.mrb[10].mxu0 }
 0x85d   :  { %v1026_v27 = vadd.f32 %v1025_v21, %v949_v25  ;;  %v1271_v28 = vpop.f32.mrb[11].mxu0 }
 0x85f   :  { %v1034_v29 = vadd.f32 %v1165_v26, %v1026_v27 }
 0x861   :  { %1340 = vtanh.f32 %v1034_v29 }
 0x86b   :  { %v1341_v30 = vpop.eup %1340 }
 0x86c   :  { %1125 = vrot.lane.b32.xlu0 %v1341_v30, %s1350_s2  ;;  %1282 = vmatmul.mubr.msk.f32.vlgmr.msra.gmra.mrb[12].mxu0 %vm116_vm5, %v1341_v30 }
 0x8de   :  { %v1126_v35 = vpop.permute.xlu0 %1125 }
 0x93f   :  { %v1115_v3 = vpop.f32.mrb[12].mxu0 }
 0x940   :  { %v1116_v32 = vadd.f32 %v1166_v31, %v1115_v3  ;;  %v1283_v33 = vpop.f32.mrb[13].mxu0 }
 0x942   :  { %1120 = vrot.lane.b32.xlu1 %v1116_v32, %s1351_s19 }
 0x9b4   :  { %v1121_v34 = vpop.permute.xlu1 %1120 }
 0x9b5   :  { %1124 = vst.msk [vmem:[%s1591_s6] sm:$0xff] %vm1123_vm11, %v1121_v34 }
 0x9b6   :  { %1129 = vst.msk [vmem:[%s1591_s6] sm:$0xff] %vm1128_vm12, %v1126_v35 }

</bundles_post_ra>
